<compile_context>
chip_gen: v7x
topology: tpu7x:2x2x1
jax: 0.10.0
libtpu: 0.0.40
codegen_flags: <defaults>
</compile_context>

<pallas_src>
import functools

import jax
import jax.numpy as jnp
from jax import lax
from jax.experimental import pallas as pl
from jax.experimental.pallas import tpu as pltpu

NUM_CLASS = 31           # the module hard-codes 31-way masks
BACKBONE_DIM = 64        # synthetic "base_network.output_num()"
BOTTLENECK_DIM = 32      # bottleneck_width (small for the demo)

LANE = 128               # TPU lane width
SUB = 8                  # f32 sublane count

H1P = 128                # backbone width padded to lanes
H2P = 128                # bottleneck width padded to lanes
CP = 128                 # class count padded to lanes


def _round_up(n, m):
    return ((n + m - 1) // m) * m


def _pad2(a, shape):
    out = jnp.zeros(shape, a.dtype)
    return out.at[: a.shape[0], : a.shape[1]].set(a)


def _spec(shape):
    nd = len(shape)
    return pl.BlockSpec(shape, lambda *_: (0,) * nd)


# ---------------------------------------------------------------------------
# Fused kernel
# ---------------------------------------------------------------------------
def fused_transfer_kernel(x_ref, wb_ref, bb_ref, wbt_ref, bbt_ref,
                          wc_ref, bc_ref, lbl_ref, out_ref, *, batch, bp):
    f32 = jnp.float32
    tb = 2 * bp                                           # stacked (src|tar) rows

    # ---- head: backbone(linear+relu) -> bottleneck(linear+relu) -> classifier
    x = x_ref[...]                                        # (tb, INP) bf16
    h = jnp.dot(x, wb_ref[...], preferred_element_type=f32) + bb_ref[...]
    h = jnp.maximum(h, 0.0)                               # (tb, H1P) f32
    feat = jnp.dot(h.astype(jnp.bfloat16), wbt_ref[...],
                   preferred_element_type=f32) + bbt_ref[...]
    feat = jnp.maximum(feat, 0.0)                         # (tb, H2P); padded cols == 0
    logits = jnp.dot(feat.astype(jnp.bfloat16), wc_ref[...],
                     preferred_element_type=f32) + bc_ref[...]   # (tb, CP)

    # ---- softmax over the 31 valid classes (padded class lanes -> -1e30)
    cls_iota = lax.broadcasted_iota(jnp.int32, (tb, CP), 1)
    logits_m = jnp.where(cls_iota < NUM_CLASS, logits, f32(-1e30))
    m = jnp.max(logits_m, axis=1, keepdims=True)
    e = jnp.exp(logits_m - m)
    denom = jnp.sum(e, axis=1, keepdims=True)
    conf = e * pl.reciprocal(denom, approx=True)          # softmax(logits, 1)
    log_probs = (logits_m - m) - jnp.log(denom)           # f32 log-softmax

    src_logp = log_probs[:bp]
    src_conf = conf[:bp]
    tar_conf = conf[bp:]
    tar_logits_m = logits_m[bp:]

    row_iota = lax.broadcasted_iota(jnp.int32, (bp, 1), 0)
    row_valid = (row_iota < batch).astype(f32)            # (bp, 1) valid-batch mask

    # ---- source: in-kernel one-hot(label) -> CE loss + confidence margin
    scls = lax.broadcasted_iota(jnp.int32, (bp, CP), 1)
    src_onehot = (scls == lbl_ref[...]).astype(f32)       # labels are (bp,1) int32
    ce = -jnp.sum(jnp.sum(src_logp * src_onehot, axis=1, keepdims=True) * row_valid,
                  axis=0, keepdims=True) * (1.0 / batch)  # (1,1) mean CE
    src_tconf = jnp.sum(src_conf * src_onehot, axis=1, keepdims=True)
    src_margin = src_tconf - jnp.max(src_conf * (1.0 - src_onehot),
                                     axis=1, keepdims=True)

    # ---- target pseudo-labels (first-argmax semantics) -> confidence margin
    tmax = jnp.max(tar_logits_m, axis=1, keepdims=True)
    first_idx = jnp.min(jnp.where(tar_logits_m == tmax, scls, CP),
                        axis=1, keepdims=True)
    tar_onehot = (scls == first_idx).astype(f32)
    tar_tconf = jnp.sum(tar_conf * tar_onehot, axis=1, keepdims=True)
    tar_margin = tar_tconf - jnp.max(tar_conf * (1.0 - tar_onehot),
                                     axis=1, keepdims=True)

    # ---- MMD + Gaussian-kernel means on the bottleneck features
    s = feat[:bp] * row_valid                             # zero padded rows
    t = feat[bp:] * row_valid
    inv_b = 1.0 / batch
    mean_s = jnp.sum(s, axis=0, keepdims=True) * inv_b
    mean_t = jnp.sum(t, axis=0, keepdims=True) * inv_b
    delta = mean_s - mean_t
    mmd = jnp.sum(delta * delta, axis=1, keepdims=True)   # (1,1)

    sn = jnp.sum(s * s, axis=1, keepdims=True)            # (bp,1)
    tn = jnp.sum(t * t, axis=1, keepdims=True)            # (bp,1)
    cross = lax.dot_general(s, t, (((1,), (1,)), ((), ())),
                            preferred_element_type=f32)   # (bp,bp), no .T of t
    d2 = jnp.maximum(sn + tn.T - 2.0 * cross, 0.0)

    rr = lax.broadcasted_iota(jnp.int32, (bp, bp), 0)
    cc = lax.broadcasted_iota(jnp.int32, (bp, bp), 1)
    pm = ((rr < batch) & (cc < batch)).astype(f32)        # valid src x tar pairs
    inv_bb = 1.0 / (batch * batch)
    gk1 = jnp.sum(jnp.sum(jnp.exp(-0.5 * d2) * pm, axis=1, keepdims=True),
                  axis=0, keepdims=True) * inv_bb         # amplitude 1, sigma 1
    gk5 = jnp.sum(jnp.sum(jnp.exp(-d2 * (1.0 / 50.0)) * pm, axis=1, keepdims=True),
                  axis=0, keepdims=True) * inv_bb         # amplitude 1, sigma 5

    # ---- pack results into one lane-dense (bp,128) slab: single unmasked store
    r8 = lax.broadcasted_iota(jnp.int32, (bp, LANE), 0)
    l8 = lax.broadcasted_iota(jnp.int32, (bp, LANE), 1)
    slab = jnp.where((r8 == 0) & (l8 == 0), ce, jnp.zeros((bp, LANE), f32))
    slab = jnp.where((r8 == 0) & (l8 == 1), mmd, slab)
    slab = jnp.where((r8 == 0) & (l8 == 2), gk1, slab)
    slab = jnp.where((r8 == 0) & (l8 == 3), gk5, slab)
    slab = jnp.where(l8 == 4, src_margin, slab)           # column 4: src margins
    slab = jnp.where(l8 == 5, tar_margin, slab)           # column 5: tar margins
    out_ref[...] = slab


# ---------------------------------------------------------------------------
# Wrapper
# ---------------------------------------------------------------------------
def init_params(key, in_dim):
    ks = jax.random.split(key, 3)
    scale = 0.02
    return {
        "wb":  scale * jax.random.normal(ks[0], (in_dim, BACKBONE_DIM), jnp.float32),
        "bb":  jnp.zeros((1, BACKBONE_DIM), jnp.float32),
        "wbt": scale * jax.random.normal(ks[1], (BACKBONE_DIM, BOTTLENECK_DIM), jnp.float32),
        "bbt": jnp.zeros((1, BOTTLENECK_DIM), jnp.float32),
        "wc":  scale * jax.random.normal(ks[2], (BOTTLENECK_DIM, NUM_CLASS), jnp.float32),
        "bc":  jnp.zeros((1, NUM_CLASS), jnp.float32),
    }


def transfer_net_forward(source, target, source_label, params):
    B = source.shape[0]
    xs = source.reshape(B, -1).astype(jnp.float32)        # glue: NCHW flatten
    xt = target.reshape(B, -1).astype(jnp.float32)
    in_dim = xs.shape[1]

    BP = _round_up(max(B, SUB), SUB)                      # padded per-domain batch
    INP = _round_up(in_dim, LANE)                         # padded input width

    # Stack source+target once (one pass through the head / one weight DMA).
    x = jnp.zeros((2 * BP, INP), jnp.float32)
    x = x.at[:B, :in_dim].set(xs)
    x = x.at[BP:BP + B, :in_dim].set(xt)
    x = x.astype(jnp.bfloat16)                            # bf16 MXU inputs

    wb = _pad2(params["wb"], (INP, H1P)).astype(jnp.bfloat16)
    bb = _pad2(params["bb"], (1, H1P))
    wbt = _pad2(params["wbt"], (H1P, H2P)).astype(jnp.bfloat16)
    bbt = _pad2(params["bbt"], (1, H2P))
    wc = _pad2(params["wc"], (H2P, CP)).astype(jnp.bfloat16)
    bc = _pad2(params["bc"], (1, CP))

    lbl = jnp.zeros((BP, 1), jnp.int32).at[:B, 0].set(source_label.astype(jnp.int32))

    operands = (x, wb, bb, wbt, bbt, wc, bc, lbl)

    flops = 2 * (2 * BP) * (INP * H1P + H1P * H2P + H2P * CP) + 2 * BP * H2P * BP
    transcendentals = (2 * BP) * CP + 2 * BP * BP + 2 * (2 * BP)
    bytes_accessed = sum(int(a.size) * a.dtype.itemsize for a in operands) + BP * LANE * 4

    kernel = functools.partial(fused_transfer_kernel, batch=B, bp=BP)

    out = pl.pallas_call(
        kernel,
        grid=(1,),
        in_specs=[_spec(a.shape) for a in operands],
        out_specs=_spec((BP, LANE)),
        out_shape=jax.ShapeDtypeStruct((BP, LANE), jnp.float32),
        compiler_params=pltpu.CompilerParams(dimension_semantics=("arbitrary",)),
        cost_estimate=pl.CostEstimate(flops=flops,
                                      transcendentals=transcendentals,
                                      bytes_accessed=bytes_accessed),
    )(*operands)

    clf_loss = out[0, 0]
    curr_mmd = out[0, 1]
    curr_gk1 = out[0, 2]
    curr_gk5 = out[0, 3]
    # out[:B, 4] / out[:B, 5] hold src/tar confidence output margins (inputs to
    # DFTransferLoss only).
    # TODO(synk): DFTransferLoss ('lmmd') is external to the provided snippet.
    transfer_loss = jnp.float32(0.0)
    return clf_loss, transfer_loss, curr_mmd, curr_gk1, curr_gk5


if __name__ == "__main__":
    key = jax.random.PRNGKey(0)
    k_src, k_tar, k_lbl, k_par = jax.random.split(key, 4)

    B, C, H, W = 2, 4, 16, 16
    source = jax.random.normal(k_src, (B, C, H, W), jnp.float32)
    target = jax.random.normal(k_tar, (B, C, H, W), jnp.float32)
    source_label = jax.random.randint(k_lbl, (B,), 0, NUM_CLASS, jnp.int32)

    params = init_params(k_par, C * H * W)

    outs = jax.jit(transfer_net_forward)(source, target, source_label, params)
    outs = jax.block_until_ready(outs)
    clf_loss, transfer_loss, curr_mmd, curr_gk1, curr_gk5 = outs
    assert all(jnp.isfinite(o) for o in outs)
    print("KERNEL_OK")
</pallas_src>

<mosaic_0001>
module attributes {stable_mosaic.version = 11 : i64} {
  func.func @fused_transfer_kernel(%arg0: i32, %arg1: memref<16x1024xbf16, #tpu.memory_space<vmem>>, %arg2: memref<1024x128xbf16, #tpu.memory_space<vmem>>, %arg3: memref<1x128xf32, #tpu.memory_space<vmem>>, %arg4: memref<128x128xbf16, #tpu.memory_space<vmem>>, %arg5: memref<1x128xf32, #tpu.memory_space<vmem>>, %arg6: memref<128x128xbf16, #tpu.memory_space<vmem>>, %arg7: memref<1x128xf32, #tpu.memory_space<vmem>>, %arg8: memref<8x1xi32, #tpu.memory_space<vmem>>, %arg9: memref<8x128xf32, #tpu.memory_space<vmem>>) attributes {dimension_semantics = [#tpu.dimension_semantics<arbitrary>], iteration_bounds = array<i64: 1>, scalar_prefetch = 0 : i64, scratch_operands = 0 : i64, tpu.core_type = #tpu.core_type<tc>, window_params = [{pipeline_mode = #tpu.pipeline_mode<synchronous>, transform_indices = @transform_0, window_bounds = array<i64: 16, 1024>}, {pipeline_mode = #tpu.pipeline_mode<synchronous>, transform_indices = @transform_1, window_bounds = array<i64: 1024, 128>}, {pipeline_mode = #tpu.pipeline_mode<synchronous>, transform_indices = @transform_2, window_bounds = array<i64: 1, 128>}, {pipeline_mode = #tpu.pipeline_mode<synchronous>, transform_indices = @transform_3, window_bounds = array<i64: 128, 128>}, {pipeline_mode = #tpu.pipeline_mode<synchronous>, transform_indices = @transform_4, window_bounds = array<i64: 1, 128>}, {pipeline_mode = #tpu.pipeline_mode<synchronous>, transform_indices = @transform_5, window_bounds = array<i64: 128, 128>}, {pipeline_mode = #tpu.pipeline_mode<synchronous>, transform_indices = @transform_6, window_bounds = array<i64: 1, 128>}, {pipeline_mode = #tpu.pipeline_mode<synchronous>, transform_indices = @transform_7, window_bounds = array<i64: 8, 1>}, {pipeline_mode = #tpu.pipeline_mode<synchronous>, transform_indices = @transform_8, window_bounds = array<i64: 8, 128>}]} {
    %c0 = arith.constant 0 : index
    %c0_0 = arith.constant 0 : index
    %0 = vector.load %arg1[%c0, %c0_0] : memref<16x1024xbf16, #tpu.memory_space<vmem>>, vector<16x1024xbf16>
    %c0_1 = arith.constant 0 : index
    %c0_2 = arith.constant 0 : index
    %1 = vector.load %arg2[%c0_1, %c0_2] : memref<1024x128xbf16, #tpu.memory_space<vmem>>, vector<1024x128xbf16>
    %cst = arith.constant dense<0.000000e+00> : vector<16x128xf32>
    %2 = tpu.matmul %0, %1, %cst {dimension_numbers = #tpu.dot_dimension_numbers<[1], [0], [0], [1], [0, 0, 1, 1], [], []>} : vector<16x1024xbf16>, vector<1024x128xbf16>, vector<16x128xf32> -> vector<16x128xf32>
    %c0_3 = arith.constant 0 : index
    %c0_4 = arith.constant 0 : index
    %3 = vector.load %arg3[%c0_3, %c0_4] : memref<1x128xf32, #tpu.memory_space<vmem>>, vector<1x128xf32>
    %4 = vector.broadcast %3 : vector<1x128xf32> to vector<16x128xf32>
    %5 = arith.addf %2, %4 : vector<16x128xf32>
    %cst_5 = arith.constant 0.000000e+00 : f32
    %6 = vector.broadcast %cst_5 : f32 to vector<16x128xf32>
    %7 = arith.maximumf %5, %6 : vector<16x128xf32>
    %8 = arith.truncf %7 : vector<16x128xf32> to vector<16x128xbf16>
    %c0_6 = arith.constant 0 : index
    %c0_7 = arith.constant 0 : index
    %9 = vector.load %arg4[%c0_6, %c0_7] : memref<128x128xbf16, #tpu.memory_space<vmem>>, vector<128x128xbf16>
    %cst_8 = arith.constant dense<0.000000e+00> : vector<16x128xf32>
    %10 = tpu.matmul %8, %9, %cst_8 {dimension_numbers = #tpu.dot_dimension_numbers<[1], [0], [0], [1], [0, 0, 1, 1], [], []>} : vector<16x128xbf16>, vector<128x128xbf16>, vector<16x128xf32> -> vector<16x128xf32>
    %c0_9 = arith.constant 0 : index
    %c0_10 = arith.constant 0 : index
    %11 = vector.load %arg5[%c0_9, %c0_10] : memref<1x128xf32, #tpu.memory_space<vmem>>, vector<1x128xf32>
    %12 = vector.broadcast %11 : vector<1x128xf32> to vector<16x128xf32>
    %13 = arith.addf %10, %12 : vector<16x128xf32>
    %cst_11 = arith.constant 0.000000e+00 : f32
    %14 = vector.broadcast %cst_11 : f32 to vector<16x128xf32>
    %15 = arith.maximumf %13, %14 : vector<16x128xf32>
    %16 = arith.truncf %15 : vector<16x128xf32> to vector<16x128xbf16>
    %c0_12 = arith.constant 0 : index
    %c0_13 = arith.constant 0 : index
    %17 = vector.load %arg6[%c0_12, %c0_13] : memref<128x128xbf16, #tpu.memory_space<vmem>>, vector<128x128xbf16>
    %cst_14 = arith.constant dense<0.000000e+00> : vector<16x128xf32>
    %18 = tpu.matmul %16, %17, %cst_14 {dimension_numbers = #tpu.dot_dimension_numbers<[1], [0], [0], [1], [0, 0, 1, 1], [], []>} : vector<16x128xbf16>, vector<128x128xbf16>, vector<16x128xf32> -> vector<16x128xf32>
    %c0_15 = arith.constant 0 : index
    %c0_16 = arith.constant 0 : index
    %19 = vector.load %arg7[%c0_15, %c0_16] : memref<1x128xf32, #tpu.memory_space<vmem>>, vector<1x128xf32>
    %20 = vector.broadcast %19 : vector<1x128xf32> to vector<16x128xf32>
    %21 = arith.addf %18, %20 : vector<16x128xf32>
    %22 = tpu.iota {dimensions = array<i32: 1>} : vector<16x128xi32>
    %c31_i32 = arith.constant 31 : i32
    %23 = vector.broadcast %c31_i32 : i32 to vector<16x128xi32>
    %24 = arith.cmpi slt, %22, %23 : vector<16x128xi32>
    %cst_17 = arith.constant -1.000000e+30 : f32
    %25 = vector.broadcast %cst_17 : f32 to vector<16x128xf32>
    %26 = arith.select %24, %21, %25 : vector<16x128xi1>, vector<16x128xf32>
    %cst_18 = arith.constant dense<0xFF800000> : vector<16xf32>
    %27 = vector.multi_reduction <maximumf>, %26, %cst_18 [1] : vector<16x128xf32> to vector<16xf32>
    %28 = vector.shape_cast %27 : vector<16xf32> to vector<16x1xf32>
    %29 = vector.broadcast %28 : vector<16x1xf32> to vector<16x128xf32>
    %30 = arith.subf %26, %29 : vector<16x128xf32>
    %31 = math.exp %30 : vector<16x128xf32>
    %cst_19 = arith.constant dense<0.000000e+00> : vector<16xf32>
    %32 = vector.multi_reduction <add>, %31, %cst_19 [1] : vector<16x128xf32> to vector<16xf32>
    %33 = vector.shape_cast %32 : vector<16xf32> to vector<16x1xf32>
    %34 = tpu.reciprocal %33 {approx = true} : vector<16x1xf32> -> vector<16x1xf32>
    %35 = vector.broadcast %34 : vector<16x1xf32> to vector<16x128xf32>
    %36 = arith.mulf %31, %35 : vector<16x128xf32>
    %37 = vector.broadcast %28 : vector<16x1xf32> to vector<16x128xf32>
    %38 = arith.subf %26, %37 : vector<16x128xf32>
    %39 = math.log %33 : vector<16x1xf32>
    %40 = vector.broadcast %39 : vector<16x1xf32> to vector<16x128xf32>
    %41 = arith.subf %38, %40 : vector<16x128xf32>
    %42 = vector.extract_strided_slice %41 {offsets = [0, 0], sizes = [8, 128], strides = [1, 1]} : vector<16x128xf32> to vector<8x128xf32>
    %43 = vector.extract_strided_slice %36 {offsets = [0, 0], sizes = [8, 128], strides = [1, 1]} : vector<16x128xf32> to vector<8x128xf32>
    %44 = vector.extract_strided_slice %36 {offsets = [8, 0], sizes = [8, 128], strides = [1, 1]} : vector<16x128xf32> to vector<8x128xf32>
    %45 = vector.extract_strided_slice %26 {offsets = [8, 0], sizes = [8, 128], strides = [1, 1]} : vector<16x128xf32> to vector<8x128xf32>
    %46 = tpu.iota {dimensions = array<i32: 0>} : vector<8x1xi32>
    %c2_i32 = arith.constant 2 : i32
    %47 = vector.broadcast %c2_i32 : i32 to vector<8x1xi32>
    %48 = arith.cmpi slt, %46, %47 : vector<8x1xi32>
    %49 = arith.extui %48 : vector<8x1xi1> to vector<8x1xi32>
    %50 = arith.sitofp %49 : vector<8x1xi32> to vector<8x1xf32>
    %51 = tpu.iota {dimensions = array<i32: 1>} : vector<8x128xi32>
    %c0_20 = arith.constant 0 : index
    %c0_21 = arith.constant 0 : index
    %52 = vector.load %arg8[%c0_20, %c0_21] : memref<8x1xi32, #tpu.memory_space<vmem>>, vector<8x1xi32>
    %53 = vector.broadcast %52 : vector<8x1xi32> to vector<8x128xi32>
    %54 = arith.cmpi eq, %51, %53 : vector<8x128xi32>
    %55 = arith.extui %54 : vector<8x128xi1> to vector<8x128xi32>
    %56 = arith.sitofp %55 : vector<8x128xi32> to vector<8x128xf32>
    %57 = arith.mulf %42, %56 : vector<8x128xf32>
    %cst_22 = arith.constant dense<0.000000e+00> : vector<8xf32>
    %58 = vector.multi_reduction <add>, %57, %cst_22 [1] : vector<8x128xf32> to vector<8xf32>
    %59 = vector.shape_cast %58 : vector<8xf32> to vector<8x1xf32>
    %60 = arith.mulf %59, %50 : vector<8x1xf32>
    %cst_23 = arith.constant dense<0.000000e+00> : vector<1xf32>
    %61 = vector.multi_reduction <add>, %60, %cst_23 [0] : vector<8x1xf32> to vector<1xf32>
    %62 = vector.shape_cast %61 : vector<1xf32> to vector<1x1xf32>
    %cst_24 = arith.constant 0.000000e+00 : f32
    %63 = vector.broadcast %cst_24 : f32 to vector<1x1xf32>
    %64 = arith.subf %63, %62 : vector<1x1xf32>
    %cst_25 = arith.constant 5.000000e-01 : f32
    %65 = vector.broadcast %cst_25 : f32 to vector<1x1xf32>
    %66 = arith.mulf %64, %65 : vector<1x1xf32>
    %67 = arith.mulf %43, %56 : vector<8x128xf32>
    %cst_26 = arith.constant dense<0.000000e+00> : vector<8xf32>
    %68 = vector.multi_reduction <add>, %67, %cst_26 [1] : vector<8x128xf32> to vector<8xf32>
    %69 = vector.shape_cast %68 : vector<8xf32> to vector<8x1xf32>
    %cst_27 = arith.constant 1.000000e+00 : f32
    %70 = vector.broadcast %cst_27 : f32 to vector<8x128xf32>
    %71 = arith.subf %70, %56 : vector<8x128xf32>
    %72 = arith.mulf %43, %71 : vector<8x128xf32>
    %cst_28 = arith.constant dense<0xFF800000> : vector<8xf32>
    %73 = vector.multi_reduction <maximumf>, %72, %cst_28 [1] : vector<8x128xf32> to vector<8xf32>
    %74 = vector.shape_cast %73 : vector<8xf32> to vector<8x1xf32>
    %75 = arith.subf %69, %74 : vector<8x1xf32>
    %cst_29 = arith.constant dense<0xFF800000> : vector<8xf32>
    %76 = vector.multi_reduction <maximumf>, %45, %cst_29 [1] : vector<8x128xf32> to vector<8xf32>
    %77 = vector.shape_cast %76 : vector<8xf32> to vector<8x1xf32>
    %78 = vector.broadcast %77 : vector<8x1xf32> to vector<8x128xf32>
    %79 = arith.cmpf oeq, %45, %78 : vector<8x128xf32>
    %c128_i32 = arith.constant 128 : i32
    %80 = vector.broadcast %c128_i32 : i32 to vector<8x128xi32>
    %81 = arith.select %79, %51, %80 : vector<8x128xi1>, vector<8x128xi32>
    %cst_30 = arith.constant dense<2147483647> : vector<8xi32>
    %82 = vector.multi_reduction <minsi>, %81, %cst_30 [1] : vector<8x128xi32> to vector<8xi32>
    %83 = vector.shape_cast %82 : vector<8xi32> to vector<8x1xi32>
    %84 = vector.broadcast %83 : vector<8x1xi32> to vector<8x128xi32>
    %85 = arith.cmpi eq, %51, %84 : vector<8x128xi32>
    %86 = arith.extui %85 : vector<8x128xi1> to vector<8x128xi32>
    %87 = arith.sitofp %86 : vector<8x128xi32> to vector<8x128xf32>
    %88 = arith.mulf %44, %87 : vector<8x128xf32>
    %cst_31 = arith.constant dense<0.000000e+00> : vector<8xf32>
    %89 = vector.multi_reduction <add>, %88, %cst_31 [1] : vector<8x128xf32> to vector<8xf32>
    %90 = vector.shape_cast %89 : vector<8xf32> to vector<8x1xf32>
    %cst_32 = arith.constant 1.000000e+00 : f32
    %91 = vector.broadcast %cst_32 : f32 to vector<8x128xf32>
    %92 = arith.subf %91, %87 : vector<8x128xf32>
    %93 = arith.mulf %44, %92 : vector<8x128xf32>
    %cst_33 = arith.constant dense<0xFF800000> : vector<8xf32>
    %94 = vector.multi_reduction <maximumf>, %93, %cst_33 [1] : vector<8x128xf32> to vector<8xf32>
    %95 = vector.shape_cast %94 : vector<8xf32> to vector<8x1xf32>
    %96 = arith.subf %90, %95 : vector<8x1xf32>
    %97 = vector.extract_strided_slice %15 {offsets = [0, 0], sizes = [8, 128], strides = [1, 1]} : vector<16x128xf32> to vector<8x128xf32>
    %98 = vector.broadcast %50 : vector<8x1xf32> to vector<8x128xf32>
    %99 = arith.mulf %97, %98 : vector<8x128xf32>
    %100 = vector.extract_strided_slice %15 {offsets = [8, 0], sizes = [8, 128], strides = [1, 1]} : vector<16x128xf32> to vector<8x128xf32>
    %101 = vector.broadcast %50 : vector<8x1xf32> to vector<8x128xf32>
    %102 = arith.mulf %100, %101 : vector<8x128xf32>
    %cst_34 = arith.constant dense<0.000000e+00> : vector<128xf32>
    %103 = vector.multi_reduction <add>, %99, %cst_34 [0] : vector<8x128xf32> to vector<128xf32>
    %104 = vector.shape_cast %103 : vector<128xf32> to vector<1x128xf32>
    %cst_35 = arith.constant 5.000000e-01 : f32
    %105 = vector.broadcast %cst_35 : f32 to vector<1x128xf32>
    %106 = arith.mulf %104, %105 : vector<1x128xf32>
    %cst_36 = arith.constant dense<0.000000e+00> : vector<128xf32>
    %107 = vector.multi_reduction <add>, %102, %cst_36 [0] : vector<8x128xf32> to vector<128xf32>
    %108 = vector.shape_cast %107 : vector<128xf32> to vector<1x128xf32>
    %cst_37 = arith.constant 5.000000e-01 : f32
    %109 = vector.broadcast %cst_37 : f32 to vector<1x128xf32>
    %110 = arith.mulf %108, %109 : vector<1x128xf32>
    %111 = arith.subf %106, %110 : vector<1x128xf32>
    %112 = arith.mulf %111, %111 : vector<1x128xf32>
    %cst_38 = arith.constant dense<0.000000e+00> : vector<1xf32>
    %113 = vector.multi_reduction <add>, %112, %cst_38 [1] : vector<1x128xf32> to vector<1xf32>
    %114 = vector.shape_cast %113 : vector<1xf32> to vector<1x1xf32>
    %115 = arith.mulf %99, %99 : vector<8x128xf32>
    %cst_39 = arith.constant dense<0.000000e+00> : vector<8xf32>
    %116 = vector.multi_reduction <add>, %115, %cst_39 [1] : vector<8x128xf32> to vector<8xf32>
    %117 = vector.shape_cast %116 : vector<8xf32> to vector<8x1xf32>
    %118 = arith.mulf %102, %102 : vector<8x128xf32>
    %cst_40 = arith.constant dense<0.000000e+00> : vector<8xf32>
    %119 = vector.multi_reduction <add>, %118, %cst_40 [1] : vector<8x128xf32> to vector<8xf32>
    %120 = vector.shape_cast %119 : vector<8xf32> to vector<8x1xf32>
    %cst_41 = arith.constant dense<0.000000e+00> : vector<8x8xf32>
    %121 = tpu.matmul %99, %102, %cst_41 {dimension_numbers = #tpu.dot_dimension_numbers<[1], [1], [0], [0], [0, 0, 1, 0], [], []>} : vector<8x128xf32>, vector<8x128xf32>, vector<8x8xf32> -> vector<8x8xf32>
    %122 = tpu.transpose %120, [1, 0] : vector<8x1xf32> -> vector<1x8xf32>
    %123 = vector.broadcast %117 : vector<8x1xf32> to vector<8x8xf32>
    %124 = vector.broadcast %122 : vector<1x8xf32> to vector<8x8xf32>
    %125 = arith.addf %123, %124 : vector<8x8xf32>
    %cst_42 = arith.constant 2.000000e+00 : f32
    %126 = vector.broadcast %cst_42 : f32 to vector<8x8xf32>
    %127 = arith.mulf %126, %121 : vector<8x8xf32>
    %128 = arith.subf %125, %127 : vector<8x8xf32>
    %cst_43 = arith.constant 0.000000e+00 : f32
    %129 = vector.broadcast %cst_43 : f32 to vector<8x8xf32>
    %130 = arith.maximumf %128, %129 : vector<8x8xf32>
    %131 = tpu.iota {dimensions = array<i32: 0>} : vector<8x8xi32>
    %132 = tpu.iota {dimensions = array<i32: 1>} : vector<8x8xi32>
    %c2_i32_44 = arith.constant 2 : i32
    %133 = vector.broadcast %c2_i32_44 : i32 to vector<8x8xi32>
    %134 = arith.cmpi slt, %131, %133 : vector<8x8xi32>
    %c2_i32_45 = arith.constant 2 : i32
    %135 = vector.broadcast %c2_i32_45 : i32 to vector<8x8xi32>
    %136 = arith.cmpi slt, %132, %135 : vector<8x8xi32>
    %137 = arith.andi %134, %136 : vector<8x8xi1>
    %138 = arith.extui %137 : vector<8x8xi1> to vector<8x8xi32>
    %139 = arith.sitofp %138 : vector<8x8xi32> to vector<8x8xf32>
    %cst_46 = arith.constant -5.000000e-01 : f32
    %140 = vector.broadcast %cst_46 : f32 to vector<8x8xf32>
    %141 = arith.mulf %140, %130 : vector<8x8xf32>
    %142 = math.exp %141 : vector<8x8xf32>
    %143 = arith.mulf %142, %139 : vector<8x8xf32>
    %cst_47 = arith.constant dense<0.000000e+00> : vector<8xf32>
    %144 = vector.multi_reduction <add>, %143, %cst_47 [1] : vector<8x8xf32> to vector<8xf32>
    %145 = vector.shape_cast %144 : vector<8xf32> to vector<8x1xf32>
    %cst_48 = arith.constant dense<0.000000e+00> : vector<1xf32>
    %146 = vector.multi_reduction <add>, %145, %cst_48 [0] : vector<8x1xf32> to vector<1xf32>
    %147 = vector.shape_cast %146 : vector<1xf32> to vector<1x1xf32>
    %cst_49 = arith.constant 2.500000e-01 : f32
    %148 = vector.broadcast %cst_49 : f32 to vector<1x1xf32>
    %149 = arith.mulf %147, %148 : vector<1x1xf32>
    %cst_50 = arith.constant 0.000000e+00 : f32
    %150 = vector.broadcast %cst_50 : f32 to vector<8x8xf32>
    %151 = arith.subf %150, %130 : vector<8x8xf32>
    %cst_51 = arith.constant 2.000000e-02 : f32
    %152 = vector.broadcast %cst_51 : f32 to vector<8x8xf32>
    %153 = arith.mulf %151, %152 : vector<8x8xf32>
    %154 = math.exp %153 : vector<8x8xf32>
    %155 = arith.mulf %154, %139 : vector<8x8xf32>
    %cst_52 = arith.constant dense<0.000000e+00> : vector<8xf32>
    %156 = vector.multi_reduction <add>, %155, %cst_52 [1] : vector<8x8xf32> to vector<8xf32>
    %157 = vector.shape_cast %156 : vector<8xf32> to vector<8x1xf32>
    %cst_53 = arith.constant dense<0.000000e+00> : vector<1xf32>
    %158 = vector.multi_reduction <add>, %157, %cst_53 [0] : vector<8x1xf32> to vector<1xf32>
    %159 = vector.shape_cast %158 : vector<1xf32> to vector<1x1xf32>
    %cst_54 = arith.constant 2.500000e-01 : f32
    %160 = vector.broadcast %cst_54 : f32 to vector<1x1xf32>
    %161 = arith.mulf %159, %160 : vector<1x1xf32>
    %162 = tpu.iota {dimensions = array<i32: 0>} : vector<8x128xi32>
    %163 = tpu.iota {dimensions = array<i32: 1>} : vector<8x128xi32>
    %c0_i32 = arith.constant 0 : i32
    %164 = vector.broadcast %c0_i32 : i32 to vector<8x128xi32>
    %165 = arith.cmpi eq, %162, %164 : vector<8x128xi32>
    %c0_i32_55 = arith.constant 0 : i32
    %166 = vector.broadcast %c0_i32_55 : i32 to vector<8x128xi32>
    %167 = arith.cmpi eq, %163, %166 : vector<8x128xi32>
    %168 = arith.andi %165, %167 : vector<8x128xi1>
    %cst_56 = arith.constant 0.000000e+00 : f32
    %169 = vector.broadcast %cst_56 : f32 to vector<8x128xf32>
    %170 = vector.shape_cast %66 : vector<1x1xf32> to vector<1x1xf32>
    %171 = vector.broadcast %170 : vector<1x1xf32> to vector<8x128xf32>
    %172 = arith.select %168, %171, %169 : vector<8x128xi1>, vector<8x128xf32>
    %c0_i32_57 = arith.constant 0 : i32
    %173 = vector.broadcast %c0_i32_57 : i32 to vector<8x128xi32>
    %174 = arith.cmpi eq, %162, %173 : vector<8x128xi32>
    %c1_i32 = arith.constant 1 : i32
    %175 = vector.broadcast %c1_i32 : i32 to vector<8x128xi32>
    %176 = arith.cmpi eq, %163, %175 : vector<8x128xi32>
    %177 = arith.andi %174, %176 : vector<8x128xi1>
    %178 = vector.shape_cast %114 : vector<1x1xf32> to vector<1x1xf32>
    %179 = vector.broadcast %178 : vector<1x1xf32> to vector<8x128xf32>
    %180 = arith.select %177, %179, %172 : vector<8x128xi1>, vector<8x128xf32>
    %c0_i32_58 = arith.constant 0 : i32
    %181 = vector.broadcast %c0_i32_58 : i32 to vector<8x128xi32>
    %182 = arith.cmpi eq, %162, %181 : vector<8x128xi32>
    %c2_i32_59 = arith.constant 2 : i32
    %183 = vector.broadcast %c2_i32_59 : i32 to vector<8x128xi32>
    %184 = arith.cmpi eq, %163, %183 : vector<8x128xi32>
    %185 = arith.andi %182, %184 : vector<8x128xi1>
    %186 = vector.shape_cast %149 : vector<1x1xf32> to vector<1x1xf32>
    %187 = vector.broadcast %186 : vector<1x1xf32> to vector<8x128xf32>
    %188 = arith.select %185, %187, %180 : vector<8x128xi1>, vector<8x128xf32>
    %c0_i32_60 = arith.constant 0 : i32
    %189 = vector.broadcast %c0_i32_60 : i32 to vector<8x128xi32>
    %190 = arith.cmpi eq, %162, %189 : vector<8x128xi32>
    %c3_i32 = arith.constant 3 : i32
    %191 = vector.broadcast %c3_i32 : i32 to vector<8x128xi32>
    %192 = arith.cmpi eq, %163, %191 : vector<8x128xi32>
    %193 = arith.andi %190, %192 : vector<8x128xi1>
    %194 = vector.shape_cast %161 : vector<1x1xf32> to vector<1x1xf32>
    %195 = vector.broadcast %194 : vector<1x1xf32> to vector<8x128xf32>
    %196 = arith.select %193, %195, %188 : vector<8x128xi1>, vector<8x128xf32>
    %c4_i32 = arith.constant 4 : i32
    %197 = vector.broadcast %c4_i32 : i32 to vector<8x128xi32>
    %198 = arith.cmpi eq, %163, %197 : vector<8x128xi32>
    %199 = vector.shape_cast %75 : vector<8x1xf32> to vector<8x1xf32>
    %200 = vector.broadcast %199 : vector<8x1xf32> to vector<8x128xf32>
    %201 = arith.select %198, %200, %196 : vector<8x128xi1>, vector<8x128xf32>
    %c5_i32 = arith.constant 5 : i32
    %202 = vector.broadcast %c5_i32 : i32 to vector<8x128xi32>
    %203 = arith.cmpi eq, %163, %202 : vector<8x128xi32>
    %204 = vector.shape_cast %96 : vector<8x1xf32> to vector<8x1xf32>
    %205 = vector.broadcast %204 : vector<8x1xf32> to vector<8x128xf32>
    %206 = arith.select %203, %205, %201 : vector<8x128xi1>, vector<8x128xf32>
    %c0_61 = arith.constant 0 : index
    %c0_62 = arith.constant 0 : index
    %207 = vector.load %arg9[%c0_61, %c0_62] : memref<8x128xf32, #tpu.memory_space<vmem>>, vector<8x128xf32>
    tpu.vector_store %arg9[%c0_61, %c0_62], %206 {strides = array<i32>} : memref<8x128xf32, #tpu.memory_space<vmem>>, vector<8x128xf32>,
    return
  }
  func.func @transform_0(%arg0: i32) -> (i32, i32) {
    %c0_i32 = arith.constant 0 : i32
    %c0_i32_0 = arith.constant 0 : i32
    %c0_i32_1 = arith.constant 0 : i32
    return %c0_i32, %c0_i32_0 : i32, i32
  }
  func.func @transform_1(%arg0: i32) -> (i32, i32) {
    %c0_i32 = arith.constant 0 : i32
    %c0_i32_0 = arith.constant 0 : i32
    %c0_i32_1 = arith.constant 0 : i32
    return %c0_i32, %c0_i32_0 : i32, i32
  }
  func.func @transform_2(%arg0: i32) -> (i32, i32) {
    %c0_i32 = arith.constant 0 : i32
    %c0_i32_0 = arith.constant 0 : i32
    %c0_i32_1 = arith.constant 0 : i32
    return %c0_i32, %c0_i32_0 : i32, i32
  }
  func.func @transform_3(%arg0: i32) -> (i32, i32) {
    %c0_i32 = arith.constant 0 : i32
    %c0_i32_0 = arith.constant 0 : i32
    %c0_i32_1 = arith.constant 0 : i32
    return %c0_i32, %c0_i32_0 : i32, i32
  }
  func.func @transform_4(%arg0: i32) -> (i32, i32) {
    %c0_i32 = arith.constant 0 : i32
    %c0_i32_0 = arith.constant 0 : i32
    %c0_i32_1 = arith.constant 0 : i32
    return %c0_i32, %c0_i32_0 : i32, i32
  }
  func.func @transform_5(%arg0: i32) -> (i32, i32) {
    %c0_i32 = arith.constant 0 : i32
    %c0_i32_0 = arith.constant 0 : i32
    %c0_i32_1 = arith.constant 0 : i32
    return %c0_i32, %c0_i32_0 : i32, i32
  }
  func.func @transform_6(%arg0: i32) -> (i32, i32) {
    %c0_i32 = arith.constant 0 : i32
    %c0_i32_0 = arith.constant 0 : i32
    %c0_i32_1 = arith.constant 0 : i32
    return %c0_i32, %c0_i32_0 : i32, i32
  }
  func.func @transform_7(%arg0: i32) -> (i32, i32) {
    %c0_i32 = arith.constant 0 : i32
    %c0_i32_0 = arith.constant 0 : i32
    %c0_i32_1 = arith.constant 0 : i32
    return %c0_i32, %c0_i32_0 : i32, i32
  }
  func.func @transform_8(%arg0: i32) -> (i32, i32) {
    %c0_i32 = arith.constant 0 : i32
    %c0_i32_0 = arith.constant 0 : i32
    %c0_i32_1 = arith.constant 0 : i32
    return %c0_i32, %c0_i32_0 : i32, i32
  }
}

</mosaic_0001>

<bundles_post_ra>
// kernel: transfer_net_forward.1
= control target key start
LH: loop header
LB: loop body
LE: loop exit
PB: predicated region body
PF: predicated region fallthrough
CT: control target
= control target key end

     0   :  { %vm1615_vm0 = vmmov 0   ;;  %vm1220_vm8 = vcmask 64512   ;;  %s2011_s1 = inlined_call_operand.vmem [shape: bf16[1024,128], index: 1, kind: input, shape index: {}]   ;;  %s2012_s0 = inlined_call_operand.vmem [shape: bf16[16,1024], index: 0, kind: input, shape index: {}]   ;;  %s2013_s3 = inlined_call_operand.vmem [shape: bf16[128,128], index: 3, kind: input, shape index: {}]   ;;  %s2014_s5 = inlined_call_operand.vmem [shape: bf16[128,128], index: 5, kind: input, shape index: {}]   ;;  %s2015_s2 = inlined_call_operand.vmem [shape: f32[1,128], index: 2, kind: input, shape index: {}]   ;;  %s2016_s4 = inlined_call_operand.vmem [shape: f32[1,128], index: 4, kind: input, shape index: {}]   ;;  %s2017_s6 = inlined_call_operand.vmem [shape: f32[1,128], index: 6, kind: input, shape index: {}]   ;;  %s2018_s7 = inlined_call_operand.vmem [shape: s32[8,1], index: 7, kind: input, shape index: {}]   ;;  %s2019_s8 = inlined_call_operand.vmem [shape: f32[8,128], index: 8, kind: output, shape index: {}]  }
   0x1   :  { %v1520_v0 = vld [vmem:[%s2011_s1 + $0x40] sm:$0xff]   ;;  %v1524_v4 = vld [vmem:[%s2011_s1 + $0x48] sm:$0xff]   ;;  %v1528_v8 = vld [vmem:[%s2011_s1 + $0x50] sm:$0xff]  }
   0x2   :  { %v1521_v1 = vld [vmem:[%s2011_s1 + $0xc0] sm:$0xff]   ;;  %1363 = vmatprep.subr.bf16.mxu0 %v1520_v0  ;;  %v1525_v5 = vld [vmem:[%s2011_s1 + $0xc8] sm:$0xff]   ;;  %v1529_v9 = vld [vmem:[%s2011_s1 + $0xd0] sm:$0xff]  }
   0x3   :  { %v1522_v2 = vld [vmem:[%s2011_s1] sm:$0xff]   ;;  %1385 = vmatprep.subr.bf16.mxu1 %v1521_v1  ;;  %v1526_v6 = vld [vmem:[%s2011_s1 + $0x8] sm:$0xff]   ;;  %v1530_v10 = vld [vmem:[%s2011_s1 + $0x10] sm:$0xff]  }
   0x4   :  { %v1523_v3 = vld [vmem:[%s2011_s1 + $0x80] sm:$0xff]   ;;  %1364 = vmatpush3.bf16.msra.mxu0 %v1522_v2  ;;  %v1527_v7 = vld [vmem:[%s2011_s1 + $0x88] sm:$0xff]   ;;  %v1531_v11 = vld [vmem:[%s2011_s1 + $0x90] sm:$0xff]  }
   0x5   :  { %1386 = vmatpush3.bf16.msra.mxu1 %v1523_v3  ;;  %1365 = vmatprep.subr.bf16.mxu0 %v1524_v4  ;;  %v1532_v12 = vld [vmem:[%s2011_s1 + $0x58] sm:$0xff]   ;;  %v1536_v16 = vld [vmem:[%s2011_s1 + $0x60] sm:$0xff]   ;;  %v1540_v20 = vld [vmem:[%s2011_s1 + $0x68] sm:$0xff]  }
   0x6   :  { %1387 = vmatprep.subr.bf16.mxu1 %v1525_v5  ;;  %v1533_v13 = vld [vmem:[%s2011_s1 + $0xd8] sm:$0xff]   ;;  %v1537_v17 = vld [vmem:[%s2011_s1 + $0xe0] sm:$0xff]   ;;  %v1541_v21 = vld [vmem:[%s2011_s1 + $0xe8] sm:$0xff]  }
   0x7   :  { %v1534_v14 = vld [vmem:[%s2011_s1 + $0x18] sm:$0xff]   ;;  %v1538_v18 = vld [vmem:[%s2011_s1 + $0x20] sm:$0xff]   ;;  %v1542_v22 = vld [vmem:[%s2011_s1 + $0x28] sm:$0xff]  }
   0x8   :  { %1366 = vmatpush3.bf16.msra.mxu0 %v1526_v6  ;;  %v1535_v15 = vld [vmem:[%s2011_s1 + $0x98] sm:$0xff]   ;;  %v1539_v19 = vld [vmem:[%s2011_s1 + $0xa0] sm:$0xff]   ;;  %v1543_v23 = vld [vmem:[%s2011_s1 + $0xa8] sm:$0xff]  }
   0x9   :  { %1388 = vmatpush3.bf16.msra.mxu1 %v1527_v7  ;;  %1367 = vmatprep.subr.bf16.mxu0 %v1528_v8  ;;  %v1544_v24 = vld [vmem:[%s2011_s1 + $0x70] sm:$0xff]   ;;  %v1548_v28 = vld [vmem:[%s2011_s1 + $0x78] sm:$0xff]   ;;  %v30_v32 = vld [vmem:[%s2012_s0] sm:$0xff] }
   0xa   :  { %1389 = vmatprep.subr.bf16.mxu1 %v1529_v9  ;;  %v1545_v25 = vld [vmem:[%s2011_s1 + $0xf0] sm:$0xff]   ;;  %v1549_v29 = vld [vmem:[%s2011_s1 + $0xf8] sm:$0xff]   ;;  %v34_v33 = vld [vmem:[%s2012_s0 + $0x20] sm:$0xff] }
   0xb   :  { %v1546_v26 = vld [vmem:[%s2011_s1 + $0x30] sm:$0xff]   ;;  %v1550_v30 = vld [vmem:[%s2011_s1 + $0x38] sm:$0xff]   ;;  %v31_v34 = vld [vmem:[%s2012_s0 + $0x8] sm:$0xff]  ;;  %v1269_v35 = vcombine.low %v30_v32, %v34_v33  ;;  %v1270_v36 = vcombine.high %v30_v32, %v34_v33 }
   0xc   :  { %1368 = vmatpush3.bf16.msra.mxu0 %v1530_v10  ;;  %v1547_v27 = vld [vmem:[%s2011_s1 + $0xb0] sm:$0xff]   ;;  %v1551_v31 = vld [vmem:[%s2011_s1 + $0xb8] sm:$0xff]   ;;  %v35_v37 = vld [vmem:[%s2012_s0 + $0x28] sm:$0xff] }
   0xd   :  { %1390 = vmatpush3.bf16.msra.mxu1 %v1531_v11  ;;  %1369 = vmatprep.subr.bf16.mxu0 %v1532_v12  ;;  %v1271_v38 = vcombine.low %v31_v34, %v35_v37  ;;  %v1272_v39 = vcombine.high %v31_v34, %v35_v37  ;;  %v1552_v40 = vld [vmem:[%s2011_s1 + $0x140] sm:$0xff]   ;;  %v1556_v44 = vld [vmem:[%s2011_s1 + $0x148] sm:$0xff]   ;;  %v1560_v48 = vld [vmem:[%s2011_s1 + $0x150] sm:$0xff]  }
   0xe   :  { %1391 = vmatprep.subr.bf16.mxu1 %v1533_v13  ;;  %629 = vmatprep.mubr.bf16.mxu0 %v1270_v36  ;;  %v1553_v41 = vld [vmem:[%s2011_s1 + $0x1c0] sm:$0xff]   ;;  %v1557_v45 = vld [vmem:[%s2011_s1 + $0x1c8] sm:$0xff]   ;;  %v1561_v49 = vld [vmem:[%s2011_s1 + $0x1d0] sm:$0xff]  }
   0xf   :  { %670 = vmatprep.mubr.bf16.mxu1 %v1272_v39  ;;  %v1554_v42 = vld [vmem:[%s2011_s1 + $0x100] sm:$0xff]   ;;  %v1558_v46 = vld [vmem:[%s2011_s1 + $0x108] sm:$0xff]   ;;  %v1562_v50 = vld [vmem:[%s2011_s1 + $0x110] sm:$0xff]  }
  0x10   :  { %1370 = vmatpush3.bf16.msra.mxu0 %v1534_v14  ;;  %v1555_v43 = vld [vmem:[%s2011_s1 + $0x180] sm:$0xff]   ;;  %v1559_v47 = vld [vmem:[%s2011_s1 + $0x188] sm:$0xff]   ;;  %v1563_v51 = vld [vmem:[%s2011_s1 + $0x190] sm:$0xff]  }
  0x11   :  { %1392 = vmatpush3.bf16.msra.mxu1 %v1535_v15  ;;  %1371 = vmatprep.subr.bf16.mxu0 %v1536_v16  ;;  %v1564_v52 = vld [vmem:[%s2011_s1 + $0x158] sm:$0xff]   ;;  %v1568_v56 = vld [vmem:[%s2011_s1 + $0x160] sm:$0xff]   ;;  %v1572_v60 = vld [vmem:[%s2011_s1 + $0x168] sm:$0xff]   ;;  %v1614_v16 = vmov 0.0  }
  0x12   :  { %1393 = vmatprep.subr.bf16.mxu1 %v1537_v17  ;;  %v1565_v53 = vld [vmem:[%s2011_s1 + $0x1d8] sm:$0xff]   ;;  %v1569_v57 = vld [vmem:[%s2011_s1 + $0x1e0] sm:$0xff]   ;;  %v1573_v61 = vld [vmem:[%s2011_s1 + $0x1e8] sm:$0xff]  }
  0x13   :  { %v1566_v54 = vld [vmem:[%s2011_s1 + $0x118] sm:$0xff]   ;;  %v1570_v58 = vld [vmem:[%s2011_s1 + $0x120] sm:$0xff]   ;;  %v1574_v62 = vld [vmem:[%s2011_s1 + $0x128] sm:$0xff]  }
  0x14   :  { %1372 = vmatpush3.bf16.msra.mxu0 %v1538_v18  ;;  %v1567_v55 = vld [vmem:[%s2011_s1 + $0x198] sm:$0xff]   ;;  %v1571_v59 = vld [vmem:[%s2011_s1 + $0x1a0] sm:$0xff]   ;;  %v1575_v63 = vld [vmem:[%s2011_s1 + $0x1a8] sm:$0xff]  }
  0x15   :  { %1394 = vmatpush3.bf16.msra.mxu1 %v1539_v19  ;;  %1373 = vmatprep.subr.bf16.mxu0 %v1540_v20  ;;  %v1576_v0 = vld [vmem:[%s2011_s1 + $0x170] sm:$0xff]   ;;  %v1580_v4 = vld [vmem:[%s2011_s1 + $0x178] sm:$0xff]   ;;  %v1584_v17 = vld [vmem:[%s2013_s3] sm:$0xff]  }
  0x16   :  { %1395 = vmatprep.subr.bf16.mxu1 %v1541_v21  ;;  %v1577_v1 = vld [vmem:[%s2011_s1 + $0x1f0] sm:$0xff]   ;;  %v1581_v5 = vld [vmem:[%s2011_s1 + $0x1f8] sm:$0xff]   ;;  %v1585_v18 = vld [vmem:[%s2013_s3 + $0x8] sm:$0xff]  }
  0x17   :  { %v1578_v2 = vld [vmem:[%s2011_s1 + $0x130] sm:$0xff]   ;;  %v1582_v6 = vld [vmem:[%s2011_s1 + $0x138] sm:$0xff]   ;;  %v1588_v21 = vld [vmem:[%s2013_s3 + $0x20] sm:$0xff]  }
  0x18   :  { %1374 = vmatpush3.bf16.msra.mxu0 %v1542_v22  ;;  %v1579_v3 = vld [vmem:[%s2011_s1 + $0x1b0] sm:$0xff]   ;;  %v1583_v7 = vld [vmem:[%s2011_s1 + $0x1b8] sm:$0xff]   ;;  %v1589_v22 = vld [vmem:[%s2013_s3 + $0x28] sm:$0xff]  }
  0x19   :  { %1396 = vmatpush3.bf16.msra.mxu1 %v1543_v23  ;;  %1375 = vmatprep.subr.bf16.mxu0 %v1544_v24  ;;  %v32_v8 = vld [vmem:[%s2012_s0 + $0x10] sm:$0xff]  ;;  %v33_v12 = vld [vmem:[%s2012_s0 + $0x18] sm:$0xff]  ;;  %v1268_v33 = vld [vmem:[%s2015_s2] ss:$0 sm:$0xff] }
  0x1a   :  { %1397 = vmatprep.subr.bf16.mxu1 %v1545_v25  ;;  %v36_v9 = vld [vmem:[%s2012_s0 + $0x30] sm:$0xff]  ;;  %v37_v13 = vld [vmem:[%s2012_s0 + $0x38] sm:$0xff]  ;;  %v1592_v25 = vld [vmem:[%s2014_s5] sm:$0xff]  }
  0x1b   :  { %v1273_v10 = vcombine.low %v32_v8, %v36_v9  ;;  %v1274_v11 = vcombine.high %v32_v8, %v36_v9  ;;  %v1275_v14 = vcombine.low %v33_v12, %v37_v13  ;;  %v1276_v15 = vcombine.high %v33_v12, %v37_v13  ;;  %v1586_v19 = vld [vmem:[%s2013_s3 + $0x10] sm:$0xff]   ;;  %v1587_v20 = vld [vmem:[%s2013_s3 + $0x18] sm:$0xff]  }
  0x1c   :  { %1376 = vmatpush3.bf16.msra.mxu0 %v1546_v26  ;;  %v1590_v23 = vld [vmem:[%s2013_s3 + $0x30] sm:$0xff]   ;;  %v1591_v24 = vld [vmem:[%s2013_s3 + $0x38] sm:$0xff]   ;;  %v1593_v26 = vld [vmem:[%s2014_s5 + $0x8] sm:$0xff]  }
  0x1d   :  { %1398 = vmatpush3.bf16.msra.mxu1 %v1547_v27  ;;  %1377 = vmatprep.subr.bf16.mxu0 %v1548_v28  ;;  %v1594_v27 = vld [vmem:[%s2014_s5 + $0x10] sm:$0xff]   ;;  %v1595_v28 = vld [vmem:[%s2014_s5 + $0x18] sm:$0xff]  }
  0x1e   :  { %1399 = vmatprep.subr.bf16.mxu1 %v1549_v29  ;;  %v1596_v29 = vld [vmem:[%s2014_s5 + $0x20] sm:$0xff]  }
  0x20   :  { %1378 = vmatpush3.bf16.msra.mxu0 %v1550_v30  ;;  %v1597_v30 = vld [vmem:[%s2014_s5 + $0x28] sm:$0xff]  }
  0x21   :  { %1400 = vmatpush3.bf16.msra.mxu1 %v1551_v31  ;;  %1407 = vmatprep.subr.bf16.mxu0 %v1552_v40 }
  0x22   :  { %1429 = vmatprep.subr.bf16.mxu1 %v1553_v41 }
  0x23   :  { %630 = vmatmul.mubr.bf16.vlgmr.msra.gmra.mrb[0].mxu0 %v1269_v35 }
  0x24   :  { %671 = vmatmul.mubr.bf16.vlgmr.msra.gmra.mrb[0].mxu1 %v1271_v38  ;;  %1408 = vmatpush3.bf16.msra.mxu0 %v1554_v42 }
  0x25   :  { %1430 = vmatpush3.bf16.msra.mxu1 %v1555_v43  ;;  %1409 = vmatprep.subr.bf16.mxu0 %v1556_v44 }
  0x26   :  { %1431 = vmatprep.subr.bf16.mxu1 %v1557_v45  ;;  %711 = vmatprep.mubr.bf16.mxu0 %v1274_v11 }
  0x27   :  { %752 = vmatprep.mubr.bf16.mxu1 %v1276_v15 }
  0x28   :  { %1410 = vmatpush3.bf16.msra.mxu0 %v1558_v46 }
  0x29   :  { %1432 = vmatpush3.bf16.msra.mxu1 %v1559_v47  ;;  %1411 = vmatprep.subr.bf16.mxu0 %v1560_v48 }
  0x2a   :  { %1433 = vmatprep.subr.bf16.mxu1 %v1561_v49 }
  0x2c   :  { %1412 = vmatpush3.bf16.msra.mxu0 %v1562_v50 }
  0x2d   :  { %1434 = vmatpush3.bf16.msra.mxu1 %v1563_v51  ;;  %1413 = vmatprep.subr.bf16.mxu0 %v1564_v52 }
  0x2e   :  { %1435 = vmatprep.subr.bf16.mxu1 %v1565_v53 }
  0x30   :  { %1414 = vmatpush3.bf16.msra.mxu0 %v1566_v54 }
  0x31   :  { %1436 = vmatpush3.bf16.msra.mxu1 %v1567_v55  ;;  %1415 = vmatprep.subr.bf16.mxu0 %v1568_v56 }
  0x32   :  { %1437 = vmatprep.subr.bf16.mxu1 %v1569_v57 }
  0x34   :  { %1416 = vmatpush3.bf16.msra.mxu0 %v1570_v58 }
  0x35   :  { %1438 = vmatpush3.bf16.msra.mxu1 %v1571_v59  ;;  %1417 = vmatprep.subr.bf16.mxu0 %v1572_v60 }
  0x36   :  { %1439 = vmatprep.subr.bf16.mxu1 %v1573_v61 }
  0x38   :  { %1418 = vmatpush3.bf16.msra.mxu0 %v1574_v62 }
  0x39   :  { %1440 = vmatpush3.bf16.msra.mxu1 %v1575_v63  ;;  %1419 = vmatprep.subr.bf16.mxu0 %v1576_v0 }
  0x3a   :  { %1441 = vmatprep.subr.bf16.mxu1 %v1577_v1 }
  0x3c   :  { %1420 = vmatpush3.bf16.msra.mxu0 %v1578_v2 }
  0x3d   :  { %1442 = vmatpush3.bf16.msra.mxu1 %v1579_v3  ;;  %1421 = vmatprep.subr.bf16.mxu0 %v1580_v4  ;;  %v1598_v3 = vld [vmem:[%s2014_s5 + $0x30] sm:$0xff]   ;;  %v1599_v4 = vld [vmem:[%s2014_s5 + $0x38] sm:$0xff]  }
  0x3e   :  { %1443 = vmatprep.subr.bf16.mxu1 %v1581_v5  ;;  %v991_v5 = vlaneseq }
  0x40   :  { %1422 = vmatpush3.bf16.msra.mxu0 %v1582_v6  ;;  %v1952_v6 = vshrl.u32 %v991_v5, 7 }
  0x41   :  { %1444 = vmatpush3.bf16.msra.mxu1 %v1583_v7  ;;  %1471 = vmatprep.subr.bf16.mxu0 %v1614_v16  ;;  %v1341_v7 = vld [vmem:[%s2016_s4] ss:$0 sm:$0xff] }
  0x42   :  { %1491 = vmatprep.subr.bf16.mxu1 %v1614_v16  ;;  %vm1019_vm1 = vcmp.lt.s32.totalorder %v1952_v6, 2  ;;  %vm1246_vm10 = vcmp.eq.s32.totalorder %v1952_v6, 0 }
  0x43   :  { %712 = vmatmul.mubr.bf16.vlgmr.msra.gmra.mrb[4].mxu0 %v1273_v10  ;;  %v1961_v11 = vsel %vm1019_vm1, 1.0, %v1614_v16 }
  0x44   :  { %753 = vmatmul.mubr.bf16.vlgmr.msra.gmra.mrb[4].mxu1 %v1275_v14  ;;  %1472 = vmatpush3.bf16.msra.mxu0 %v1584_v17 }
  0x45   :  { %1473 = vmatprep.subr.bf16.mxu0 %v1614_v16  ;;  %1487 = vmatprep.mubr.msk.bf16.mxu0 %vm1615_vm0, %v1614_v16 }
  0x46   :  { %1507 = vmatprep.mubr.msk.bf16.mxu1 %vm1615_vm0, %v1614_v16  ;;  %1492 = vmatpush3.bf16.msra.mxu1 %v1592_v25 }
  0x47   :  { %1493 = vmatprep.subr.bf16.mxu1 %v1614_v16 }
  0x48   :  { %1474 = vmatpush3.bf16.msra.mxu0 %v1585_v18 }
  0x49   :  { %1475 = vmatprep.subr.bf16.mxu0 %v1614_v16 }
  0x4a   :  { %1494 = vmatpush3.bf16.msra.mxu1 %v1593_v26 }
  0x4b   :  { %1495 = vmatprep.subr.bf16.mxu1 %v1614_v16 }
  0x4c   :  { %1476 = vmatpush3.bf16.msra.mxu0 %v1586_v19 }
  0x4d   :  { %1477 = vmatprep.subr.bf16.mxu0 %v1614_v16 }
  0x4e   :  { %1496 = vmatpush3.bf16.msra.mxu1 %v1594_v27 }
  0x4f   :  { %1497 = vmatprep.subr.bf16.mxu1 %v1614_v16 }
  0x50   :  { %1478 = vmatpush3.bf16.msra.mxu0 %v1587_v20 }
  0x51   :  { %1479 = vmatprep.subr.bf16.mxu0 %v1614_v16 }
  0x52   :  { %1498 = vmatpush3.bf16.msra.mxu1 %v1595_v28 }
  0x53   :  { %1499 = vmatprep.subr.bf16.mxu1 %v1614_v16 }
  0x54   :  { %1480 = vmatpush3.bf16.msra.mxu0 %v1588_v21 }
  0x55   :  { %1481 = vmatprep.subr.bf16.mxu0 %v1614_v16 }
  0x56   :  { %1500 = vmatpush3.bf16.msra.mxu1 %v1596_v29 }
  0x57   :  { %1501 = vmatprep.subr.bf16.mxu1 %v1614_v16 }
  0x58   :  { %1482 = vmatpush3.bf16.msra.mxu0 %v1589_v22 }
  0x59   :  { %1483 = vmatprep.subr.bf16.mxu0 %v1614_v16 }
  0x5a   :  { %1502 = vmatpush3.bf16.msra.mxu1 %v1597_v30 }
  0x5b   :  { %1503 = vmatprep.subr.bf16.mxu1 %v1614_v16 }
  0x5c   :  { %1484 = vmatpush3.bf16.msra.mxu0 %v1590_v23 }
  0x5d   :  { %1485 = vmatprep.subr.bf16.mxu0 %v1614_v16 }
  0x5e   :  { %1504 = vmatpush3.bf16.msra.mxu1 %v1598_v3 }
  0x5f   :  { %1505 = vmatprep.subr.bf16.mxu1 %v1614_v16 }
  0x60   :  { %1486 = vmatpush3.bf16.msra.mxu0 %v1591_v24 }
  0x61   :  { %1511 = vmatprep.subr.mxu0 %v1614_v16 }
  0x62   :  { %1506 = vmatpush3.bf16.msra.mxu1 %v1599_v4 }
  0xf6   :  { %v1379_v31 = vpop.f32.mrb[0].mxu0 }
  0xf7   :  { %v1401_v32 = vpop.f32.mrb[0].mxu1  ;;  %v1380_v34 = vpop.f32.mrb[1].mxu0 }
  0xf8   :  { %v1381_v35 = vadd.f32 %v1380_v34, %v1379_v31  ;;  %v1402_v36 = vpop.f32.mrb[1].mxu1  ;;  %v1382_v37 = vpop.f32.mrb[2].mxu0 }
  0xf9   :  { %v1403_v38 = vadd.f32 %v1402_v36, %v1401_v32  ;;  %v1404_v39 = vpop.f32.mrb[2].mxu1  ;;  %v1383_v40 = vpop.f32.mrb[3].mxu0  ;;  %v1967_v36 = vand.u32 127, %v991_v5 }
  0xfa   :  { %v632_v41 = vadd.f32 %v1381_v35, %v1268_v33  ;;  %v1384_v42 = vadd.f32 %v1383_v40, %v1382_v37  ;;  %v1405_v43 = vpop.f32.mrb[3].mxu1 }
  0xfb   :  { %v1406_v44 = vadd.f32 %v1405_v43, %v1404_v39  ;;  %v1350_v39 = vld [vmem:[%s2017_s6] ss:$0 sm:$0xff]  ;;  %vm993_vm2 = vcmp.lt.s32.totalorder %v1967_v36, 31  ;;  %vm1212_vm6 = vcmp.lt.s32.totalorder %v1967_v36, 2  ;;  %vm1247_vm11 = vcmp.eq.s32.totalorder %v1967_v36, 0 }
  0xfc   :  { %v673_v45 = vadd.f32 %v1403_v38, %v632_v41  ;;  %v635_v46 = vadd.f32 %v1384_v42, %v1268_v33  ;;  %vm1213_vm7 = vmand %vm1019_vm1, %vm1212_vm6  ;;  %vm1250_vm12 = vcmp.eq.s32.totalorder %v1967_v36, 1  ;;  %vm1253_vm13 = vcmp.eq.s32.totalorder %v1967_v36, 2 }
  0xfd   :  { %vm1248_vm14 = vmand %vm1246_vm10, %vm1247_vm11  ;;  %vm1256_vm1 = vcmp.eq.s32.totalorder %v1967_v36, 3 }
  0xfe   :  { %v676_v47 = vadd.f32 %v1406_v44, %v635_v46  ;;  %vm1251_vm15 = vmand %vm1246_vm10, %vm1250_vm12 }
 0x116   :  { %v1423_v48 = vpop.f32.mrb[4].mxu0 }
 0x117   :  { %v1445_v49 = vpop.f32.mrb[4].mxu1  ;;  %v1424_v50 = vpop.f32.mrb[5].mxu0 }
 0x118   :  { %v1425_v51 = vadd.f32 %v1424_v50, %v1423_v48  ;;  %v1446_v52 = vpop.f32.mrb[5].mxu1  ;;  %v1426_v53 = vpop.f32.mrb[6].mxu0  ;;  %v1022_v50 = vld [vmem:[%s2018_s7] sm:$0xff] }
 0x119   :  { %v1447_v54 = vadd.f32 %v1446_v52, %v1445_v49  ;;  %v1448_v55 = vpop.f32.mrb[6].mxu1  ;;  %v1427_v56 = vpop.f32.mrb[7].mxu0  ;;  %v1616_v49 = vmov 0  }
 0x11a   :  { %v714_v57 = vadd.f32 %v1425_v51, %v673_v45  ;;  %v1428_v58 = vadd.f32 %v1427_v56, %v1426_v53  ;;  %v1449_v59 = vpop.f32.mrb[7].mxu1  ;;  %1519 = vset.pattern.permute.xlu0 %v1616_v49 }
 0x11b   :  { %v1450_v60 = vadd.f32 %v1449_v59, %v1448_v55 }
 0x11c   :  { %v755_v61 = vadd.f32 %v1447_v54, %v714_v57  ;;  %v717_v62 = vadd.f32 %v1428_v58, %v676_v47 }
 0x11e   :  { %v758_v63 = vadd.f32 %v1450_v60, %v717_v62  ;;  %v761_v0 = vmax.f32 %v755_v61, 0.0 }
 0x120   :  { %v762_v1 = vmax.f32 %v758_v63, 0.0 }
 0x122   :  { %v763_v2 = vpack.c.bf16 %v762_v1, %v761_v0 }
 0x124   :  { %1488 = vmatmul.mubr.bf16.vlgmr.msra.gmra.mrb[8].mxu0 %v763_v2 }
 0x125   :  { %1513 = vmatprep.mubr.msk.f32.mxu0 %vm1615_vm0, %v1614_v16  ;;  %vm1254_vm0 = vmand %vm1246_vm10, %vm1253_vm13 }
 0x1f7   :  { %v869_v8 = vpop.f32.mrb[8].mxu0 }
 0x1f8   :  { %v870_v9 = vadd.f32 %v1341_v7, %v869_v8  ;;  %v1489_v10 = vpop.f32.mrb[9].mxu0 }
 0x1f9   :  { %v872_v12 = vpop.f32.mrb[10].mxu0 }
 0x1fa   :  { %v876_v13 = vmax.f32 %v870_v9, 0.0  ;;  %v873_v14 = vadd.f32 %v1341_v7, %v872_v12  ;;  %v1490_v15 = vpop.f32.mrb[11].mxu0 }
 0x1fc   :  { %v1076_v17 = vmul.f32 %v1961_v11, %v876_v13  ;;  %v877_v18 = vmax.f32 %v873_v14, 0.0 }
 0x1fe   :  { %v878_v19 = vpack.c.bf16 %v877_v18, %v876_v13  ;;  %v1077_v20 = vmul.f32 %v1961_v11, %v877_v18  ;;  %v1078_v21 = vrot.slane %v1076_v17, 4  ;;  %v1096_v48 = vmul.f32 %v1076_v17, %v1076_v17 }
 0x200   :  { %1508 = vmatmul.mubr.bf16.vlgmr.msra.gmra.mrb[8].mxu1 %v878_v19  ;;  %1512 = vmatpush3.xpose.msra.mxu0 %v1077_v20  ;;  %v1079_v22 = vadd.f32 %v1078_v21, %v1076_v17  ;;  %v1085_v23 = vrot.slane %v1077_v20, 4  ;;  %v1099_v60 = vmul.f32 %v1077_v20, %v1077_v20 }
 0x202   :  { %v1080_v24 = vrot.slane %v1079_v22, 2  ;;  %v1086_v25 = vadd.f32 %v1085_v23, %v1077_v20 }
 0x203   :  { %1514 = vmatmul.mubr.f32.vlgmr.msra.gmra.mrb[12].mxu0 %v1076_v17  ;;  %v1206_v17 = vsub.s32 0, %v1952_v6 }
 0x204   :  { %v1081_v26 = vadd.f32 %v1080_v24, %v1079_v22  ;;  %v1087_v27 = vrot.slane %v1086_v25, 2 }
 0x206   :  { %v1082_v28 = vrot.slane %v1081_v26, 1  ;;  %v1088_v29 = vadd.f32 %v1087_v27, %v1086_v25 }
 0x208   :  { %v1083_v30 = vadd.f32 %v1082_v28, %v1081_v26  ;;  %v1089_v31 = vrot.slane %v1088_v29, 1 }
 0x20a   :  { %v1090_v32 = vadd.f32 %v1089_v31, %v1088_v29  ;;  %v1084_v33 = vmul.f32 0.5, %v1083_v30  ;;  %v1362_v29 = vsel %vm1213_vm7, 1.0, %v1614_v16 }
 0x20c   :  { %v1091_v34 = vmul.f32 0.5, %v1090_v32 }
 0x20e   :  { %v1965_v35 = vsub.f32 %v1084_v33, %v1091_v34 }
 0x2d3   :  { %v984_v37 = vpop.f32.mrb[8].mxu1 }
 0x2d4   :  { %v1509_v38 = vpop.f32.mrb[9].mxu1  ;;  %v985_v45 = vadd.f32 %v1350_v39, %v984_v37 }
 0x2d5   :  { %v987_v40 = vpop.f32.mrb[10].mxu1 }
 0x2d6   :  { %v988_v41 = vadd.f32 %v1350_v39, %v987_v40  ;;  %v1510_v42 = vpop.f32.mrb[11].mxu1  ;;  %v1168_v43 = vpop.f32.mrb[12].mxu0  ;;  %v994_v47 = vsel %vm993_vm2, %v985_v45, -1e+30 }
 0x2d7   :  { %v1515_v44 = vpop.f32.mrb[13].mxu0  ;;  %v1209_v20 = vmul.f32 2.0, %v1168_v43  ;;  %v1093_v42 = vmul.f32 %v1965_v35, %v1965_v35 }
 0x2d8   :  { %v995_v46 = vsel %vm993_vm2, %v988_v41, -1e+30  ;;  %vm1257_vm2 = vmand %vm1246_vm10, %vm1256_vm1 }
 0x2d9   :  { %998 = vmax.xlane.f32.xlu0 %v995_v46 }
 0x2dd   :  { %996 = vmax.xlane.f32.xlu0 %v994_v47 }
 0x2e1   :  { %1097 = vadd.xlane.f32.xlu0 %v1096_v48 }
 0x2f7   :  { %1024 = vperm.xlu0 %1519, %v1022_v50  }
 0x366   :  { %v999_v51 = vpop.xlane.xlu0 %998 }
 0x367   :  { %vm1049_vm3 = vcmp.eq.f32.partialorder %v995_v46, %v999_v51  ;;  %v1001_v55 = vsub.f32 %v995_v46, %v999_v51 }
 0x368   :  { %v1050_v52 = vsel %vm1049_vm3, %v1967_v36, 128  ;;  %vm1259_vm3 = vcmp.eq.s32.totalorder %v1967_v36, 4 }
 0x369   :  { %v1052_v53 = vshra.s32 %v1050_v52, 16  ;;  %v1004_v59 = vmul.f32 1.442695, %v1001_v55  ;;  %v1051_v63 = vand.u32 65535, %v1050_v52 }
 0x36a   :  { %v997_v54 = vpop.xlane.xlu0 %996 }
 0x36b   :  { %v1000_v56 = vsub.f32 %v994_v47, %v997_v54  ;;  %v1054_v57 = vcvt.s32.f32 %v1052_v53  ;;  %v1053_v1 = vcvt.s32.f32 %v1051_v63 }
 0x36d   :  { %v1002_v58 = vmul.f32 1.442695, %v1000_v56  ;;  %1055 = vmin.xlane.f32.xlu1 %v1054_v57 }
 0x36e   :  { %v1098_v5 = vpop.xlane.xlu0 %1097 }
 0x36f   :  { %1600 = vpow2.f32 %v1002_v58 }
 0x370   :  { %1602 = vpow2.f32 %v1004_v59 }
 0x371   :  { %1100 = vadd.xlane.f32.xlu1 %v1099_v60 }
 0x376   :  { %v1025_v7 = vpop.permute.xlu0 %1024 }
 0x377   :  { %vm1026_vm5 = vcmp.eq.s32.totalorder %v1967_v36, %v1025_v7 }
 0x378   :  { %v1360_v12 = vsel %vm1026_vm5, 1.0, %v1614_v16 }
 0x379   :  { %v1601_v61 = vpop.eup %1600  ;;  %v1044_v46 = vsub.f32 1.0, %v1360_v12 }
 0x37a   :  { %1006 = vadd.xlane.f32.xlu1 %v1601_v61  ;;  %v1977_v62 = vpop.eup %1602 }
 0x37e   :  { %1008 = vadd.xlane.f32.xlu1 %v1977_v62 }
 0x3fa   :  { %v1056_v0 = vpop.xlane.xlu1 %1055 }
 0x3fb   :  { %vm1057_vm4 = vcmp.eq.f32.partialorder %v1054_v57, %v1056_v0  ;;  %v1062_v37 = vcvt.f32.s32 %v1056_v0 }
 0x3fc   :  { %v1058_v2 = vsel %vm1057_vm4, %v1053_v1, inf  ;;  %vm1261_vm4 = vcmp.eq.s32.totalorder %v1967_v36, 5 }
 0x3fd   :  { %1059 = vmin.xlane.f32.xlu1 %v1058_v2  ;;  %v1063_v41 = vshll.u32 %v1062_v37, 16 }
 0x3fe   :  { %v1101_v3 = vpop.xlane.xlu1 %1100 }
 0x407   :  { %v1007_v4 = vpop.xlane.xlu1 %1006 }
 0x408   :  { %1604 = vlog2.f32 %v1007_v4 }
 0x40b   :  { %v1009_v14 = vpop.xlane.xlu1 %1008 }
 0x412   :  { %v1605_v8 = vpop.eup %1604 }
 0x413   :  { %v1015_v9 = vmul.f32 0.6931472, %v1605_v8 }
 0x415   :  { %v1016_v10 = vsub.f32 %v1000_v56, %v1015_v9 }
 0x417   :  { %v1029_v13 = vmul.f32 %v1360_v12, %v1016_v10 }
 0x419   :  { %1030 = vadd.xlane.f32.xlu0 %v1029_v13 }
 0x430   :  { %1172 = vxpose.xlu1.b32.start.end [1/1] (short) (narrow) %v1101_v3, 8 }
 0x48a   :  { %v1060_v15 = vpop.xlane.xlu1 %1059 }
 0x48b   :  { %v1061_v40 = vcvt.f32.s32 %v1060_v15 }
 0x48d   :  { %v1064_v44 = vadd.s32 %v1063_v41, %v1061_v40 }
 0x48f   :  { %vm1065_vm9 = vcmp.eq.s32.totalorder %v1967_v36, %v1064_v44 }
 0x490   :  { %v1361_v49 = vsel %vm1065_vm9, 1.0, %v1614_v16 }
 0x491   :  { %v1071_v52 = vsub.f32 1.0, %v1361_v49 }
 0x4a6   :  { %v1031_v35 = vpop.xlane.xlu0 %1030 }
 0x4a7   :  { %v1032_v54 = vmul.f32 %v1961_v11, %v1031_v35 }
 0x4a9   :  { %v1033_v55 = vrot.slane %v1032_v54, 4 }
 0x4ab   :  { %v1034_v56 = vadd.f32 %v1033_v55, %v1032_v54 }
 0x4ad   :  { %v1035_v57 = vrot.slane %v1034_v56, 2 }
 0x4af   :  { %v1036_v58 = vadd.f32 %v1035_v57, %v1034_v56 }
 0x4b0   :  { %v1188_v18 = vpop.trf.xlu1 }
 0x4b1   :  { %v1207_v19 = vrot.slane %v1188_v18, %v1206_v17  ;;  %v1037_v59 = vrot.slane %v1036_v58, 1 }
 0x4b3   :  { %v1208_v21 = vadd.f32 %v1207_v19, %v1098_v5  ;;  %v1038_v1 = vadd.f32 %v1037_v59, %v1036_v58 }
 0x4b5   :  { %v1210_v22 = vsub.f32 %v1208_v21, %v1209_v20  ;;  %v1039_v7 = vsub.f32 0.0, %v1038_v1 }
 0x4b7   :  { %v1211_v23 = vmax.f32 %v1210_v22, 0.0  ;;  %v1040_v13 = vmul.f32 0.5, %v1039_v7 }
 0x4b9   :  { %v1216_v24 = vmul.f32 -0.5, %v1211_v23  ;;  %v1231_v25 = vsub.f32 0.0, %v1211_v23  ;;  %v1249_v18 = vsel %vm1248_vm14, %v1040_v13, 0.0 }
 0x4bb   :  { %v1217_v26 = vmul.f32 1.442695, %v1216_v24  ;;  %v1232_v27 = vmul.f32 0.02, %v1231_v25 }
 0x4bd   :  { %1606 = vpow2.f32 %v1217_v26  ;;  %v1233_v28 = vmul.f32 1.442695, %v1232_v27 }
 0x4bf   :  { %1608 = vpow2.f32 %v1233_v28 }
 0x4c0   :  { %1610 = vrcp.f32 %v1007_v4 }
 0x4c1   :  { %1612 = vrcp.f32 %v1009_v14 }
 0x4c7   :  { %v1607_v30 = vpop.eup %1606 }
 0x4c8   :  { %v1219_v31 = vmul.f32 %v1607_v30, %v1362_v29 }
 0x4c9   :  { %v1609_v32 = vpop.eup %1608 }
 0x4ca   :  { %v1221_v33 = vsel %vm1220_vm8, %v1219_v31, 0.0  ;;  %v1235_v34 = vmul.f32 %v1609_v32, %v1362_v29  ;;  %v1611_v38 = vpop.eup %1610 }
 0x4cb   :  { %1222 = vadd.xlane.f32.xlu1 %v1221_v33  ;;  %v1012_v43 = vmul.f32 %v1611_v38, %v1601_v61  ;;  %v1613_v47 = vpop.eup %1612 }
 0x4cc   :  { %v1236_v39 = vsel %vm1220_vm8, %v1235_v34, 0.0  ;;  %v1013_v50 = vmul.f32 %v1613_v47, %v1977_v62 }
 0x4cd   :  { %1237 = vadd.xlane.f32.xlu0 %v1236_v39  ;;  %v1041_v45 = vmul.f32 %v1360_v12, %v1012_v43  ;;  %v1045_v48 = vmul.f32 %v1044_v46, %v1012_v43 }
 0x4ce   :  { %v1068_v51 = vmul.f32 %v1361_v49, %v1013_v50  ;;  %v1072_v53 = vmul.f32 %v1071_v52, %v1013_v50 }
 0x4d1   :  { %1094 = vadd.xlane.f32.xlu0 %v1093_v42 }
 0x4d5   :  { %1042 = vadd.xlane.f32.xlu0 %v1041_v45 }
 0x4d9   :  { %1046 = vmax.xlane.f32.xlu0 %v1045_v48 }
 0x4dd   :  { %1069 = vadd.xlane.f32.xlu0 %v1068_v51 }
 0x4e1   :  { %1073 = vmax.xlane.f32.xlu0 %v1072_v53 }
 0x558   :  { %v1223_v60 = vpop.xlane.xlu1 %1222 }
 0x559   :  { %v1224_v61 = vrot.slane %v1223_v60, 4 }
 0x55a   :  { %v1238_v63 = vpop.xlane.xlu0 %1237 }
 0x55b   :  { %v1225_v16 = vadd.f32 %v1224_v61, %v1223_v60  ;;  %v1239_v0 = vrot.slane %v1238_v63, 4 }
 0x55d   :  { %v1226_v62 = vrot.slane %v1225_v16, 2  ;;  %v1240_v2 = vadd.f32 %v1239_v0, %v1238_v63 }
 0x55e   :  { %v1095_v3 = vpop.xlane.xlu0 %1094 }
 0x55f   :  { %v1227_v4 = vadd.f32 %v1226_v62, %v1225_v16  ;;  %v1241_v5 = vrot.slane %v1240_v2, 2  ;;  %v1252_v20 = vsel %vm1251_vm15, %v1095_v3, %v1249_v18 }
 0x561   :  { %v1228_v8 = vrot.slane %v1227_v4, 1  ;;  %v1242_v9 = vadd.f32 %v1241_v5, %v1240_v2 }
 0x562   :  { %v1043_v11 = vpop.xlane.xlu0 %1042 }
 0x563   :  { %v1229_v10 = vadd.f32 %v1228_v8, %v1227_v4  ;;  %v1243_v12 = vrot.slane %v1242_v9, 1 }
 0x565   :  { %v1244_v14 = vadd.f32 %v1243_v12, %v1242_v9  ;;  %v1230_v15 = vmul.f32 0.25, %v1229_v10 }
 0x566   :  { %v1047_v17 = vpop.xlane.xlu0 %1046 }
 0x567   :  { %v1245_v19 = vmul.f32 0.25, %v1244_v14  ;;  %v1255_v21 = vsel %vm1254_vm0, %v1230_v15, %v1252_v20  ;;  %v1048_v23 = vsub.f32 %v1043_v11, %v1047_v17 }
 0x569   :  { %v1258_v24 = vsel %vm1257_vm2, %v1245_v19, %v1255_v21 }
 0x56a   :  { %v1070_v22 = vpop.xlane.xlu0 %1069  ;;  %v1260_v27 = vsel %vm1259_vm3, %v1048_v23, %v1258_v24 }
 0x56e   :  { %v1074_v25 = vpop.xlane.xlu0 %1073 }
 0x56f   :  { %v1075_v26 = vsub.f32 %v1070_v22, %v1074_v25 }
 0x571   :  { %v1262_v28 = vsel %vm1261_vm4, %v1075_v26, %v1260_v27 }
 0x572   :  { %1263 = vst [vmem:[%s2019_s8] sm:$0xff] %v1262_v28 }

</bundles_post_ra>
